<compile_context>
chip_gen: v7x
topology: tpu7x:2x2x1
jax: 0.10.0
libtpu: 0.0.40
codegen_flags: <defaults>
</compile_context>

<pallas_src>
import numpy as np
import jax
import jax.numpy as jnp
from jax.experimental import pallas as pl
from jax.experimental.pallas import tpu as pltpu


def _mhsa_kernel(x_ref, th_ref, wqkv_ref, wy_ref, by_ref, o_ref):
    # x_ref:    (1, L, D)        bf16 input tokens for this batch element
    # th_ref:   (1, 1, L, C//2)  f32 rotary angles for this (batch, head)
    # wqkv_ref: (1, 3, D, C)     bf16 q/k/v weights for this head (q/k de-interleaved)
    # wy_ref:   (1, C, D)        bf16 rows of the y_proj weight for this head
    # by_ref:   (1, D)           f32 y_proj bias
    # o_ref:    (1, L, D)        bf16 output block (resident across the head axis)
    h = pl.program_id(1)
    x = x_ref[0]                                    # (L, D) bf16
    L, D = x.shape
    C = wy_ref.shape[1]
    half = th_ref.shape[3]
    scale = 1.0 / (C ** 0.5)

    # Head 0 of this batch element: seed the resident output block with the
    # y_proj bias; every head then accumulates its projected contribution.
    @pl.when(h == 0)
    def _():
        o_ref[0] = jnp.broadcast_to(by_ref[...], (L, D)).astype(o_ref.dtype)

    # Per-head q/k/v projections as three lane-aligned (L, C) dots.
    # bf16 MXU operands, f32 accumulation.
    q = jnp.dot(x, wqkv_ref[0, 0], preferred_element_type=jnp.float32)
    k = jnp.dot(x, wqkv_ref[0, 1], preferred_element_type=jnp.float32)
    v = jnp.dot(x, wqkv_ref[0, 2], preferred_element_type=jnp.float32)

    # qk RMS-norm (eps=1e-5, no affine); permutation invariant, so unaffected
    # by the real/imag de-interleave.  Fold 1/sqrt(C) into q's multiply.
    q = q * (jax.lax.rsqrt(jnp.mean(q * q, axis=-1, keepdims=True) + 1e-5) * scale)
    k = k * jax.lax.rsqrt(jnp.mean(k * k, axis=-1, keepdims=True) + 1e-5)

    # RoPE in de-interleaved form ([real | imag] columns).  Only half-width
    # angles come from HBM; trig on the EUP, rotate-half on the XLU (or a
    # concat of half slices when the half-width is not lane aligned).
    th = th_ref[0, 0]                               # (L, half) f32
    cos = jnp.cos(th)
    sin = jnp.sin(th)
    cos_p = jnp.concatenate([cos, cos], axis=-1)    # (L, C)
    sin_p = jnp.concatenate([-sin, sin], axis=-1)   # (L, C)
    if half % 128 == 0:
        def rot_half(t):
            return pltpu.roll(t, shift=half, axis=1)
    else:
        def rot_half(t):
            return jnp.concatenate([t[:, half:], t[:, :half]], axis=-1)
    q = q * cos_p + rot_half(q) * sin_p
    k = k * cos_p + rot_half(k) * sin_p

    # Scores (scale already folded into q) + hand-rolled softmax.
    s = jax.lax.dot_general(q.astype(jnp.bfloat16), k.astype(jnp.bfloat16),
                            (((1,), (1,)), ((), ())),
                            preferred_element_type=jnp.float32)      # (L, L)
    m = jnp.max(s, axis=-1, keepdims=True)
    e = jnp.exp(s - m)
    l = jnp.sum(e, axis=-1, keepdims=True)

    # e @ v first, then scale the (L, C) result by 1/l (approx EUP reciprocal)
    # instead of normalizing the full (L, L) matrix.
    ev = jnp.dot(e.astype(jnp.bfloat16), v.astype(jnp.bfloat16),
                 preferred_element_type=jnp.float32)                 # (L, C)
    y_h = ev * pl.reciprocal(l, approx=True)

    # Fold this head through its rows of the y_proj weight straight into the
    # resident output block (f32 add, bf16 store).
    proj = jnp.dot(y_h.astype(jnp.bfloat16), wy_ref[0],
                   preferred_element_type=jnp.float32)               # (L, D)
    o_ref[0] = (o_ref[0] + proj).astype(o_ref.dtype)


def _vmem_limit_bytes(L, D, C, half):
    """Footprint-based scoped-VMEM request (per-step blocks x2 buffers + live
    intermediates + headroom), clamped below physical VMEM."""
    blocks = 2 * (L * D * 2          # x block (bf16)
                  + L * half * 4     # theta block (f32)
                  + 3 * D * C * 2    # per-head qkv weights (bf16)
                  + C * D * 2        # per-head y_proj rows (bf16)
                  + D * 4            # bias (f32)
                  + L * D * 2)       # output block (bf16)
    live = 4 * (2 * L * L + 8 * L * C + 4 * L * half + L * D)  # scores/exp + q/k/v/ev/rope temps
    need = int((blocks + live) * 3 // 2) + (4 << 20)
    try:
        cap = pltpu.get_tpu_info().vmem_capacity_bytes
    except Exception:
        cap = 64 << 20               # conservative (v7x physical per-core VMEM)
    return max(16 << 20, min(need, cap - (8 << 20)))


def prepare_mhsa_params(wqkv, wy, by, heads):
    """One-time host-side weight prep: per-head layout, q/k real/imag column
    de-interleave baked into the qkv weights, bf16 MXU operands."""
    three_d, D = wqkv.shape
    assert three_d == 3 * D and D % heads == 0
    C = D // heads
    assert C % 2 == 0
    # [r0, i0, r1, i1, ...] -> [r0, r1, ... | i0, i1, ...]; q and k share the
    # permutation and RMS-norm is permutation invariant, so q @ k^T (and hence
    # the output, since v / y_proj stay unpermuted) matches the original math.
    perm = np.concatenate([np.arange(0, C, 2), np.arange(1, C, 2)])
    cols = np.stack([np.concatenate([0 * D + h * C + perm,
                                     1 * D + h * C + perm,
                                     2 * D + h * C + np.arange(C)])
                     for h in range(heads)])                            # (H, 3C)
    wqkv_h = (jnp.asarray(wqkv).T[:, cols.reshape(-1)]
              .reshape(D, heads, 3, C).transpose(1, 2, 0, 3)
              .astype(jnp.bfloat16))                                    # (H, 3, D, C)
    wy_h = jnp.asarray(wy).T.reshape(heads, C, D).astype(jnp.bfloat16)  # (H, C, D)
    by2 = jnp.asarray(by).reshape(1, D).astype(jnp.float32)             # (1, D)
    return wqkv_h, wy_h, by2


@jax.jit
def mhsa_forward(x, theta, wqkv_h, wy_h, by2):
    """x: (B, L, D), theta: (B, L, D//2); weights from prepare_mhsa_params."""
    B, L, D = x.shape
    heads, _, _, C = wqkv_h.shape
    half = C // 2

    x_bf = x.astype(jnp.bfloat16)                   # MXU operand: halve its HBM traffic
    th = (theta.astype(jnp.float32)
          .reshape(B, L, heads, half).transpose(0, 2, 1, 3))           # (B, H, L, half)

    return pl.pallas_call(
        _mhsa_kernel,
        out_shape=jax.ShapeDtypeStruct((B, L, D), jnp.bfloat16),
        grid=(B, heads),
        in_specs=[
            pl.BlockSpec((1, L, D), lambda b, h: (b, 0, 0)),           # x (bf16)
            pl.BlockSpec((1, 1, L, half), lambda b, h: (b, h, 0, 0)),  # theta (f32)
            pl.BlockSpec((1, 3, D, C), lambda b, h: (h, 0, 0, 0)),     # qkv weights (bf16)
            pl.BlockSpec((1, C, D), lambda b, h: (h, 0, 0)),           # y_proj rows (bf16)
            pl.BlockSpec((1, D), lambda b, h: (0, 0)),                 # y_proj bias (f32)
        ],
        out_specs=pl.BlockSpec((1, L, D), lambda b, h: (b, 0, 0)),
        compiler_params=pltpu.CompilerParams(
            dimension_semantics=("parallel", "arbitrary"),
            vmem_limit_bytes=_vmem_limit_bytes(L, D, C, half)),
    )(x_bf, th, wqkv_h, wy_h, by2)


def mhsa_reference(x, theta, wqkv, wy, by, heads):
    """Pure-JAX mirror of the PyTorch forward (interleaved RoPE, original weights)."""
    B, L, D = x.shape
    C = D // heads
    qkv = x @ wqkv.T                                                # (B, L, 3D)
    qkv = qkv.reshape(B, L, 3, heads, C).transpose(2, 0, 3, 1, 4)   # (3, B, H, L, C)
    q, k, v = qkv[0], qkv[1], qkv[2]

    def rms(t):
        return t * jax.lax.rsqrt(jnp.mean(t * t, axis=-1, keepdims=True) + 1e-5)

    q, k = rms(q), rms(k)
    th = theta.reshape(B, L, heads, C // 2).transpose(0, 2, 1, 3)   # (B, H, L, C/2)
    cos, sin = jnp.cos(th), jnp.sin(th)

    def rope(t):
        tp = t.reshape(B, heads, L, C // 2, 2)
        tr, ti = tp[..., 0], tp[..., 1]
        return jnp.stack([tr * cos - ti * sin,
                          tr * sin + ti * cos], axis=-1).reshape(B, heads, L, C)

    q, k = rope(q), rope(k)
    s = jnp.einsum('bhqc,bhkc->bhqk', q, k) / (C ** 0.5)
    p = jax.nn.softmax(s, axis=-1)
    y = jnp.einsum('bhqk,bhkc->bhqc', p, v)
    y = y.transpose(0, 2, 1, 3).reshape(B, L, D)
    return y @ wy.T + by


if __name__ == "__main__":
    B, L, heads = 2, 8, 2
    D = 32                          # channels = heads * head_dim, head_dim = 16

    key = jax.random.PRNGKey(0)
    kx, kt, kw1, kw2, kb = jax.random.split(key, 5)
    x = jax.random.normal(kx, (B, L, D), dtype=jnp.float32)
    theta = jax.random.uniform(kt, (B, L, D // 2), dtype=jnp.float32,
                               minval=0.0, maxval=2.0 * np.pi)
    wqkv = 0.08 * jax.random.normal(kw1, (3 * D, D), dtype=jnp.float32)   # qkv_proj.weight
    wy = 0.08 * jax.random.normal(kw2, (D, D), dtype=jnp.float32)         # y_proj.weight
    by = 0.01 * jax.random.normal(kb, (D,), dtype=jnp.float32)            # y_proj.bias

    params = prepare_mhsa_params(wqkv, wy, by, heads)       # one-time prep, off hot path
    out = jax.block_until_ready(mhsa_forward(x, theta, *params))
    ref = jax.block_until_ready(mhsa_reference(x, theta, wqkv, wy, by, heads))

    # bf16 MXU operands / bf16 output with f32 accumulation + approx reciprocal:
    # compare with bf16-appropriate tolerance.
    np.testing.assert_allclose(np.asarray(out.astype(jnp.float32)), np.asarray(ref),
                               atol=2e-2, rtol=2e-2)

    # TODO(synk): dropout (p=0 in eval), dense/sparse-CSR attention masks and
    # gradient checkpointing are training/infra features not ported here.
    print("KERNEL_OK")
</pallas_src>

<mosaic_0001>
module attributes {stable_mosaic.version = 11 : i64} {
  func.func @_mhsa_kernel(%arg0: i32, %arg1: i32, %arg2: memref<1x8x32xbf16, #tpu.memory_space<vmem>>, %arg3: memref<1x1x8x8xf32, #tpu.memory_space<vmem>>, %arg4: memref<1x3x32x16xbf16, #tpu.memory_space<vmem>>, %arg5: memref<1x16x32xbf16, #tpu.memory_space<vmem>>, %arg6: memref<1x32xf32, #tpu.memory_space<vmem>>, %arg7: memref<1x8x32xbf16, #tpu.memory_space<vmem>>) attributes {dimension_semantics = [#tpu.dimension_semantics<parallel>, #tpu.dimension_semantics<arbitrary>], iteration_bounds = array<i64: 2, 2>, scalar_prefetch = 0 : i64, scratch_operands = 0 : i64, tpu.core_type = #tpu.core_type<tc>, window_params = [{transform_indices = @transform_0, window_bounds = array<i64: 1, 8, 32>}, {transform_indices = @transform_1, window_bounds = array<i64: 1, 1, 8, 8>}, {transform_indices = @transform_2, window_bounds = array<i64: 1, 3, 32, 16>}, {transform_indices = @transform_3, window_bounds = array<i64: 1, 16, 32>}, {pipeline_mode = #tpu.pipeline_mode<synchronous>, transform_indices = @transform_4, window_bounds = array<i64: 1, 32>}, {transform_indices = @transform_5, window_bounds = array<i64: 1, 8, 32>}]} {
    %c0 = arith.constant 0 : index
    %c0_0 = arith.constant 0 : index
    %c0_1 = arith.constant 0 : index
    %0 = vector.load %arg2[%c0, %c0_0, %c0_1] : memref<1x8x32xbf16, #tpu.memory_space<vmem>>, vector<1x8x32xbf16>
    %1 = vector.shape_cast %0 : vector<1x8x32xbf16> to vector<8x32xbf16>
    %c0_i32 = arith.constant 0 : i32
    %2 = arith.cmpi eq, %arg1, %c0_i32 : i32
    %3 = arith.extui %2 : i1 to i32
    %c0_i32_2 = arith.constant 0 : i32
    %4 = arith.cmpi ne, %3, %c0_i32_2 : i32
    scf.if %4 {
      %c0_41 = arith.constant 0 : index
      %c0_42 = arith.constant 0 : index
      %84 = vector.load %arg6[%c0_41, %c0_42] : memref<1x32xf32, #tpu.memory_space<vmem>>, vector<1x32xf32>
      %85 = vector.shape_cast %84 : vector<1x32xf32> to vector<1x32xf32>
      %86 = vector.broadcast %85 : vector<1x32xf32> to vector<8x32xf32>
      %87 = arith.truncf %86 : vector<8x32xf32> to vector<8x32xbf16>
      %c0_43 = arith.constant 0 : index
      %c0_44 = arith.constant 0 : index
      %c0_45 = arith.constant 0 : index
      %88 = vector.load %arg7[%c0_43, %c0_44, %c0_45] : memref<1x8x32xbf16, #tpu.memory_space<vmem>>, vector<1x8x32xbf16>
      %89 = vector.shape_cast %88 : vector<1x8x32xbf16> to vector<8x32xbf16>
      %90 = vector.shape_cast %87 : vector<8x32xbf16> to vector<1x8x32xbf16>
      tpu.vector_store %arg7[%c0_43, %c0_44, %c0_45], %90 {strides = array<i32>} : memref<1x8x32xbf16, #tpu.memory_space<vmem>>, vector<1x8x32xbf16>,
    } else {
    }
    %c0_3 = arith.constant 0 : index
    %c0_4 = arith.constant 0 : index
    %c0_5 = arith.constant 0 : index
    %c0_6 = arith.constant 0 : index
    %5 = vector.load %arg4[%c0_3, %c0_4, %c0_5, %c0_6] : memref<1x3x32x16xbf16, #tpu.memory_space<vmem>>, vector<1x1x32x16xbf16>
    %6 = vector.shape_cast %5 : vector<1x1x32x16xbf16> to vector<32x16xbf16>
    %cst = arith.constant dense<0.000000e+00> : vector<8x16xf32>
    %7 = tpu.matmul %1, %6, %cst {dimension_numbers = #tpu.dot_dimension_numbers<[1], [0], [0], [1], [0, 0, 1, 1], [], []>} : vector<8x32xbf16>, vector<32x16xbf16>, vector<8x16xf32> -> vector<8x16xf32>
    %c0_7 = arith.constant 0 : index
    %c1 = arith.constant 1 : index
    %c0_8 = arith.constant 0 : index
    %c0_9 = arith.constant 0 : index
    %8 = vector.load %arg4[%c0_7, %c1, %c0_8, %c0_9] : memref<1x3x32x16xbf16, #tpu.memory_space<vmem>>, vector<1x1x32x16xbf16>
    %9 = vector.shape_cast %8 : vector<1x1x32x16xbf16> to vector<32x16xbf16>
    %cst_10 = arith.constant dense<0.000000e+00> : vector<8x16xf32>
    %10 = tpu.matmul %1, %9, %cst_10 {dimension_numbers = #tpu.dot_dimension_numbers<[1], [0], [0], [1], [0, 0, 1, 1], [], []>} : vector<8x32xbf16>, vector<32x16xbf16>, vector<8x16xf32> -> vector<8x16xf32>
    %c0_11 = arith.constant 0 : index
    %c2 = arith.constant 2 : index
    %c0_12 = arith.constant 0 : index
    %c0_13 = arith.constant 0 : index
    %11 = vector.load %arg4[%c0_11, %c2, %c0_12, %c0_13] : memref<1x3x32x16xbf16, #tpu.memory_space<vmem>>, vector<1x1x32x16xbf16>
    %12 = vector.shape_cast %11 : vector<1x1x32x16xbf16> to vector<32x16xbf16>
    %cst_14 = arith.constant dense<0.000000e+00> : vector<8x16xf32>
    %13 = tpu.matmul %1, %12, %cst_14 {dimension_numbers = #tpu.dot_dimension_numbers<[1], [0], [0], [1], [0, 0, 1, 1], [], []>} : vector<8x32xbf16>, vector<32x16xbf16>, vector<8x16xf32> -> vector<8x16xf32>
    %14 = arith.mulf %7, %7 : vector<8x16xf32>
    %cst_15 = arith.constant dense<0.000000e+00> : vector<8xf32>
    %15 = vector.multi_reduction <add>, %14, %cst_15 [1] : vector<8x16xf32> to vector<8xf32>
    %16 = vector.shape_cast %15 : vector<8xf32> to vector<8x1xf32>
    %cst_16 = arith.constant 1.600000e+01 : f32
    %17 = vector.broadcast %cst_16 : f32 to vector<8x1xf32>
    %18 = arith.divf %16, %17 : vector<8x1xf32>
    %cst_17 = arith.constant 9.99999974E-6 : f32
    %19 = vector.broadcast %cst_17 : f32 to vector<8x1xf32>
    %20 = arith.addf %18, %19 : vector<8x1xf32>
    %21 = math.rsqrt %20 : vector<8x1xf32>
    %cst_18 = arith.constant 2.500000e-01 : f32
    %22 = vector.broadcast %cst_18 : f32 to vector<8x1xf32>
    %23 = arith.mulf %21, %22 : vector<8x1xf32>
    %24 = vector.broadcast %23 : vector<8x1xf32> to vector<8x16xf32>
    %25 = arith.mulf %7, %24 : vector<8x16xf32>
    %26 = arith.mulf %10, %10 : vector<8x16xf32>
    %cst_19 = arith.constant dense<0.000000e+00> : vector<8xf32>
    %27 = vector.multi_reduction <add>, %26, %cst_19 [1] : vector<8x16xf32> to vector<8xf32>
    %28 = vector.shape_cast %27 : vector<8xf32> to vector<8x1xf32>
    %cst_20 = arith.constant 1.600000e+01 : f32
    %29 = vector.broadcast %cst_20 : f32 to vector<8x1xf32>
    %30 = arith.divf %28, %29 : vector<8x1xf32>
    %cst_21 = arith.constant 9.99999974E-6 : f32
    %31 = vector.broadcast %cst_21 : f32 to vector<8x1xf32>
    %32 = arith.addf %30, %31 : vector<8x1xf32>
    %33 = math.rsqrt %32 : vector<8x1xf32>
    %34 = vector.broadcast %33 : vector<8x1xf32> to vector<8x16xf32>
    %35 = arith.mulf %10, %34 : vector<8x16xf32>
    %c0_22 = arith.constant 0 : index
    %c0_23 = arith.constant 0 : index
    %c0_24 = arith.constant 0 : index
    %c0_25 = arith.constant 0 : index
    %36 = vector.load %arg3[%c0_22, %c0_23, %c0_24, %c0_25] : memref<1x1x8x8xf32, #tpu.memory_space<vmem>>, vector<1x1x8x8xf32>
    %37 = vector.shape_cast %36 : vector<1x1x8x8xf32> to vector<8x8xf32>
    %38 = math.cos %37 : vector<8x8xf32>
    %39 = math.sin %37 : vector<8x8xf32>
    %40 = tpu.concatenate %38, %38 in 1 : vector<8x8xf32>, vector<8x8xf32> -> vector<8x16xf32>
    %cst_26 = arith.constant 0.000000e+00 : f32
    %41 = vector.broadcast %cst_26 : f32 to vector<8x8xf32>
    %42 = arith.subf %41, %39 : vector<8x8xf32>
    %43 = tpu.concatenate %42, %39 in 1 : vector<8x8xf32>, vector<8x8xf32> -> vector<8x16xf32>
    %44 = arith.mulf %25, %40 : vector<8x16xf32>
    %45 = vector.extract_strided_slice %25 {offsets = [0, 8], sizes = [8, 8], strides = [1, 1]} : vector<8x16xf32> to vector<8x8xf32>
    %46 = vector.extract_strided_slice %25 {offsets = [0, 0], sizes = [8, 8], strides = [1, 1]} : vector<8x16xf32> to vector<8x8xf32>
    %47 = tpu.concatenate %45, %46 in 1 : vector<8x8xf32>, vector<8x8xf32> -> vector<8x16xf32>
    %48 = arith.mulf %47, %43 : vector<8x16xf32>
    %49 = arith.addf %44, %48 : vector<8x16xf32>
    %50 = arith.mulf %35, %40 : vector<8x16xf32>
    %51 = vector.extract_strided_slice %35 {offsets = [0, 8], sizes = [8, 8], strides = [1, 1]} : vector<8x16xf32> to vector<8x8xf32>
    %52 = vector.extract_strided_slice %35 {offsets = [0, 0], sizes = [8, 8], strides = [1, 1]} : vector<8x16xf32> to vector<8x8xf32>
    %53 = tpu.concatenate %51, %52 in 1 : vector<8x8xf32>, vector<8x8xf32> -> vector<8x16xf32>
    %54 = arith.mulf %53, %43 : vector<8x16xf32>
    %55 = arith.addf %50, %54 : vector<8x16xf32>
    %56 = arith.truncf %49 : vector<8x16xf32> to vector<8x16xbf16>
    %57 = arith.truncf %55 : vector<8x16xf32> to vector<8x16xbf16>
    %cst_27 = arith.constant dense<0.000000e+00> : vector<8x8xf32>
    %58 = tpu.matmul %56, %57, %cst_27 {dimension_numbers = #tpu.dot_dimension_numbers<[1], [1], [0], [0], [0, 0, 1, 0], [], []>} : vector<8x16xbf16>, vector<8x16xbf16>, vector<8x8xf32> -> vector<8x8xf32>
    %cst_28 = arith.constant dense<0xFF800000> : vector<8xf32>
    %59 = vector.multi_reduction <maximumf>, %58, %cst_28 [1] : vector<8x8xf32> to vector<8xf32>
    %60 = vector.shape_cast %59 : vector<8xf32> to vector<8x1xf32>
    %61 = vector.broadcast %60 : vector<8x1xf32> to vector<8x8xf32>
    %62 = arith.subf %58, %61 : vector<8x8xf32>
    %63 = math.exp %62 : vector<8x8xf32>
    %cst_29 = arith.constant dense<0.000000e+00> : vector<8xf32>
    %64 = vector.multi_reduction <add>, %63, %cst_29 [1] : vector<8x8xf32> to vector<8xf32>
    %65 = vector.shape_cast %64 : vector<8xf32> to vector<8x1xf32>
    %66 = arith.truncf %63 : vector<8x8xf32> to vector<8x8xbf16>
    %67 = arith.truncf %13 : vector<8x16xf32> to vector<8x16xbf16>
    %cst_30 = arith.constant dense<0.000000e+00> : vector<8x16xf32>
    %68 = tpu.matmul %66, %67, %cst_30 {dimension_numbers = #tpu.dot_dimension_numbers<[1], [0], [0], [1], [0, 0, 1, 1], [], []>} : vector<8x8xbf16>, vector<8x16xbf16>, vector<8x16xf32> -> vector<8x16xf32>
    %69 = tpu.reciprocal %65 {approx = true} : vector<8x1xf32> -> vector<8x1xf32>
    %70 = vector.broadcast %69 : vector<8x1xf32> to vector<8x16xf32>
    %71 = arith.mulf %68, %70 : vector<8x16xf32>
    %72 = arith.truncf %71 : vector<8x16xf32> to vector<8x16xbf16>
    %c0_31 = arith.constant 0 : index
    %c0_32 = arith.constant 0 : index
    %c0_33 = arith.constant 0 : index
    %73 = vector.load %arg5[%c0_31, %c0_32, %c0_33] : memref<1x16x32xbf16, #tpu.memory_space<vmem>>, vector<1x16x32xbf16>
    %74 = vector.shape_cast %73 : vector<1x16x32xbf16> to vector<16x32xbf16>
    %cst_34 = arith.constant dense<0.000000e+00> : vector<8x32xf32>
    %75 = tpu.matmul %72, %74, %cst_34 {dimension_numbers = #tpu.dot_dimension_numbers<[1], [0], [0], [1], [0, 0, 1, 1], [], []>} : vector<8x16xbf16>, vector<16x32xbf16>, vector<8x32xf32> -> vector<8x32xf32>
    %c0_35 = arith.constant 0 : index
    %c0_36 = arith.constant 0 : index
    %c0_37 = arith.constant 0 : index
    %76 = vector.load %arg7[%c0_35, %c0_36, %c0_37] : memref<1x8x32xbf16, #tpu.memory_space<vmem>>, vector<1x8x32xbf16>
    %77 = vector.shape_cast %76 : vector<1x8x32xbf16> to vector<8x32xbf16>
    %78 = arith.extf %77 : vector<8x32xbf16> to vector<8x32xf32>
    %79 = arith.addf %78, %75 : vector<8x32xf32>
    %80 = arith.truncf %79 : vector<8x32xf32> to vector<8x32xbf16>
    %c0_38 = arith.constant 0 : index
    %c0_39 = arith.constant 0 : index
    %c0_40 = arith.constant 0 : index
    %81 = vector.load %arg7[%c0_38, %c0_39, %c0_40] : memref<1x8x32xbf16, #tpu.memory_space<vmem>>, vector<1x8x32xbf16>
    %82 = vector.shape_cast %81 : vector<1x8x32xbf16> to vector<8x32xbf16>
    %83 = vector.shape_cast %80 : vector<8x32xbf16> to vector<1x8x32xbf16>
    tpu.vector_store %arg7[%c0_38, %c0_39, %c0_40], %83 {strides = array<i32>} : memref<1x8x32xbf16, #tpu.memory_space<vmem>>, vector<1x8x32xbf16>,
    return
  }
  func.func @transform_0(%arg0: i32, %arg1: i32) -> (i32, i32, i32) {
    %c0_i32 = arith.constant 0 : i32
    %c0_i32_0 = arith.constant 0 : i32
    %c0_i32_1 = arith.constant 0 : i32
    return %arg0, %c0_i32, %c0_i32_0 : i32, i32, i32
  }
  func.func @transform_1(%arg0: i32, %arg1: i32) -> (i32, i32, i32, i32) {
    %c0_i32 = arith.constant 0 : i32
    %c0_i32_0 = arith.constant 0 : i32
    %c0_i32_1 = arith.constant 0 : i32
    return %arg0, %arg1, %c0_i32, %c0_i32_0 : i32, i32, i32, i32
  }
  func.func @transform_2(%arg0: i32, %arg1: i32) -> (i32, i32, i32, i32) {
    %c0_i32 = arith.constant 0 : i32
    %c0_i32_0 = arith.constant 0 : i32
    %c0_i32_1 = arith.constant 0 : i32
    %c0_i32_2 = arith.constant 0 : i32
    return %arg1, %c0_i32, %c0_i32_0, %c0_i32_1 : i32, i32, i32, i32
  }
  func.func @transform_3(%arg0: i32, %arg1: i32) -> (i32, i32, i32) {
    %c0_i32 = arith.constant 0 : i32
    %c0_i32_0 = arith.constant 0 : i32
    %c0_i32_1 = arith.constant 0 : i32
    return %arg1, %c0_i32, %c0_i32_0 : i32, i32, i32
  }
  func.func @transform_4(%arg0: i32, %arg1: i32) -> (i32, i32) {
    %c0_i32 = arith.constant 0 : i32
    %c0_i32_0 = arith.constant 0 : i32
    %c0_i32_1 = arith.constant 0 : i32
    return %c0_i32, %c0_i32_0 : i32, i32
  }
  func.func @transform_5(%arg0: i32, %arg1: i32) -> (i32, i32, i32) {
    %c0_i32 = arith.constant 0 : i32
    %c0_i32_0 = arith.constant 0 : i32
    %c0_i32_1 = arith.constant 0 : i32
    return %arg0, %c0_i32, %c0_i32_0 : i32, i32, i32
  }
}

</mosaic_0001>

<bundles_post_ra>
// kernel: mhsa_forward.1
= control target key start
LH: loop header
LB: loop body
LE: loop exit
PB: predicated region body
PF: predicated region fallthrough
CT: control target
= control target key end

     0   :  { %10 = vsyncpa [#allocation3], 0  ;;  %s1640_s0 = inlined_call_operand.vmem [shape: bf16[2,8,32], index: 0, kind: input, shape index: {}]   ;;  %s1641_s1 = inlined_call_operand.vmem [shape: f32[2,2,8,8], index: 1, kind: input, shape index: {}]   ;;  %s1642_s2 = inlined_call_operand.vmem [shape: bf16[2,3,32,16], index: 2, kind: input, shape index: {}]   ;;  %s1643_s3 = inlined_call_operand.vmem [shape: bf16[2,16,32], index: 3, kind: input, shape index: {}]   ;;  %s1644_s4 = inlined_call_operand.vmem [shape: f32[1,32], index: 4, kind: input, shape index: {}]   ;;  %s1645_s5 = inlined_call_operand.hbm [shape: bf16[2,8,32], index: 5, kind: output, shape index: {}]  }
   0x1   :  { %12 = vsyncpa [#allocation3 + $0x1], 0  ;;  %s1393_s18 = smov 0   ;;  %s1395_s19 = smov 0  }
   0x2   :  { %s1397_s20 = smov 0   ;;  %s1399_s21 = smov 0  }
   0x3   :  { %s1401_s22 = smov 0   ;;  %s1403_s23 = smov 0  }
   0x4   :  { %s1405_s24 = smov 0   ;;  %s1407_s25 = smov 0  }
   0x5 LB: > { %1652 = sst [smem:[#allocation5_spill]] %s1330_s20  ;;  %s1046_s26 = sadd.s32 4294967295, %s1350_s25   ;;  %s1350_s25 = sphi %s1407_s25, %s18_s25   ;;  %s1346_s24 = sphi %s1405_s24, %s1668_s24   ;;  %s1342_s23 = sphi %s1403_s23, %s1671_s23   ;;  %s1338_s22 = sphi %s1401_s22, %s1666_s22   ;;  %s1334_s21 = sphi %s1399_s21, %s1665_s21   ;;  %s1330_s20 = sphi %s1397_s20, %s1664_s20   ;;  %s1326_s19 = sphi %s1395_s19, %s1670_s19   ;;  %s1322_s18 = sphi %s1393_s18, %s1669_s18  }
   0x6   : > { %1653 = sst [smem:[#allocation6_spill]] %s1342_s23  ;;  %s1047_s27 = sadd.s32 4294967294, %s1350_s25  }
   0x7   : > { %1654 = sst [smem:[#allocation7_spill]] %s1346_s24  ;;  %s27_s28 = sadd.s32 1, %s1342_s23 }
   0x8   : > { %p28_p0 = scmp.ge.s32.totalorder %s27_s28, 2  ;;  %s30_s29 = sadd.s32 1, %s1346_s24 }
   0x9   : > { %p174_p1 = scmp.ne.s32.totalorder %s1330_s20, %s1326_s19  ;;  %p175_p2 = scmp.eq.s32.totalorder %s1046_s26, 3 }
   0xa   : > { %s1673_s28 = smov (%p28_p0, %s27_s28), 0  ;;  %s1675_s29 = smov (!%p28_p0, %s30_s29), %s1346_s24 }
   0xb   : > { %1655 = sst [smem:[#allocation8_spill]] %s1673_s28  ;;  %p1442_p3 = por %p175_p2, %p174_p1 }
   0xc   : > { %p180_p4 = scmp.ne.s32.totalorder %s1326_s19, %s1322_s18  ;;  %p32_p5 = scmp.ge.s32.totalorder %s1675_s29, 2 }
   0xd   : > { %p181_p6 = scmp.eq.s32.totalorder %s1047_s27, 3  ;;  %p1050_p7 = scmp.ge.s32.totalorder %s1350_s25, 1 }
   0xe   : > { %p236_p8 = scmp.lt.s32.totalorder %s1350_s25, 5  ;;  %s1677_s29 = smov (%p32_p5, %s1675_s29), 0 }
   0xf   : > { %1657 = sst [smem:[#allocation9_spill]] %s1677_s29  ;;  %p1452_p9 = por %p181_p6, %p180_p4 }
  0x10   : > { %p237_p10 = pnand %p1050_p7, %p236_p8  ;;  %s161_s7 = ssub.s32 %s1346_s24, %s1677_s29 }
  0x11   : > { %s1658_s6 = scalar_select %p1452_p9, 1, 0 }
  0x12   : > { %s164_s8 = sadd.s32 1, %s1330_s20  ;;  %p162_p11 = scmp.eq.s32.totalorder %s161_s7, 0 }
  0x13   : > { %1659 = sst [smem:[#allocation10_spill]] %s1658_s6  ;;  %240 = sbr.rel (%p237_p10) target bundleno = 1373 (0x55d), region = 40 }
  0x14   : > { %s1460_s9 = scalar_select %p162_p11, %s1330_s20, %s164_s8  }
  0x15   : > { %s1648_s10 = sand.u32 (!%p237_p10), 1, %s1326_s19   ;;  %p281_p12 = scmp.lt.s32.totalorder (!%p237_p10), %s1338_s22, 1 }
  0x16   : > { %1660 = sst [smem:[#allocation11_spill]] %s1460_s9  ;;  %s1051_s11 = sshll.u32 (!%p237_p10), %s1648_s10, 2 }
  0x17   : > { %p287_p13 = scmp.lt.s32.totalorder (!%p237_p10), %s1334_s21, 1  ;;  %p1058_p0 = scmp.ne.s32.totalorder (!%p237_p10), %s1334_s21, 0 }
  0x1a   : > { %s282_s12 = scalar_select %p281_p12, %s1338_s22, 1 }
  0x1b   : > { %s288_s13 = scalar_select %p287_p13, %s1334_s21, 1 }
  0x1c   : > { %s1052_s14 = sshll.u32 %s282_s12, 2  ;;  %s1053_s15 = sshll.u32 %s282_s12, 1  ;;  %v1059_v1 = vld [vmem:[%s1644_s4] ss:$0 sm:$0xff] (!%p1058_p0)  ;;  %vm317_vm0 = vcmask (!%p1058_p0), 257024  }
  0x1d   : > { %s284_s26 = scalar_lea.vmem %s1640_s0, %s1052_s14  ;;  %s290_s27 = sadd.s32 %s1053_s15, %s288_s13  ;;  %v316_v2 = vpack.c.bf16 (!%p1058_p0), %v1059_v1, %v1059_v1 }
  0x1e   : > { %s1054_s7 = sshll.u32 %s290_s27, 3  ;;  %s1151_s8 = smul.u32 48, %s288_s13  ;;  %v1472_v0 = vld [vmem:[%s284_s26] sm:$0xf] }
  0x1f   : > { %s1477_s24 = scalar_lea.vmem %s1641_s1, %s1054_s7  ;;  %s1093_s10 = sshll.u32 %s288_s13, 3 }
  0x20   : > { %s1482_s20 = scalar_lea.vmem %s1642_s2, %s1151_s8  ;;  %s1487_s14 = scalar_lea.vmem %s1643_s3, %s1093_s10 }
  0x21   : > { %s1489_s15 = scalar_lea.vmem [#allocation2], %s1051_s11  ;;  %308 = sbr.rel (%p1058_p0) target bundleno = 40 (0x28), region = 44 }
  0x22   : > { %318 = vst.msk [vmem:[%s1489_s15] sm:$0xf] (!%p1058_p0), %vm317_vm0, %v316_v2 }
  0x28 PF: > { %v1237_v3 = vld [vmem:[%s1482_s20 + $0x10] sm:$0xff]   ;;  %v1352_v4 = vmov 0.0   ;;  %v1238_v5 = vld [vmem:[%s1482_s20] sm:$0xff]   ;;  %v1239_v6 = vld [vmem:[%s1482_s20 + $0x18] sm:$0xff]   ;;  %vm1353_vm1 = vmmov 0   ;;  %vm335_vm2 = vcmask 261120  }
  0x29   : > { %1117 = vmatprep.subr.bf16.mxu1 %v1352_v4  ;;  %1109 = vmatprep.subr.bf16.mxu0 %v1352_v4  ;;  %v1240_v7 = vld [vmem:[%s1482_s20 + $0x8] sm:$0xff]   ;;  %v1519_v8 = vld [vmem:[%s1477_s24] sm:$0xff]  ;;  %v1354_v17 = vmov 2102212464   ;;  %v1355_v21 = vmov 683565275  }
  0x2a   : > { %1118 = vmatpush3.bf16.msra.mxu1 %v1237_v3  ;;  %1121 = vmatprep.mubr.msk.bf16.mxu1 %vm1353_vm1, %v1352_v4  ;;  %v516_v9 = vand.u32 2139095040, %v1519_v8  ;;  %v513_v16 = vand.u32 2147483647, %v1519_v8  ;;  %v1356_v23 = vmov 2475754826   ;;  %vm515_vm10 = vcmp.lt.s32.totalorder %v1519_v8, 0 }
  0x2b   : > { %1110 = vmatpush3.bf16.msra.mxu0 %v1238_v5  ;;  %1119 = vmatprep.subr.bf16.mxu1 %v1352_v4  ;;  %v1357_v26 = vmov 2131351028   ;;  %v1358_v32 = vmov 920167782   ;;  %v1359_v38 = vmov 1326507024   ;;  %vm605_vm15 = vweird.f32 %v1519_v8 }
  0x2c   : > { %1111 = vmatprep.subr.bf16.mxu0 %v1352_v4  ;;  %1113 = vmatprep.mubr.msk.bf16.mxu0 %vm1353_vm1, %v1352_v4  ;;  %v517_v10 = vshrl.u32 %v516_v9, 23  ;;  %v520_v19 = vand.u32 8388607, %v513_v16  ;;  %vm514_vm11 = vcmp.le.f32.partialorder %v513_v16, 0.7853982  ;;  %s1360_s21 = smov 8  }
  0x2d   : > { %vm494_vm0 = vcmask 130048   ;;  %s1361_s23 = smov 120   ;;  %s934_s24 = sshll.u32 %s1489_s15, 4  ;;  %s1586_s24 = int_to_ptr.vmem [resolvable:$true] %s934_s24 }
  0x2e   : > { %1120 = vmatpush3.bf16.msra.mxu1 %v1239_v6  ;;  %v1077_v11 = vadd.s32 4294967169, %v517_v10  ;;  %v521_v30 = vor.u32 8388608, %v520_v19  ;;  %s1661_s10 = sand.u32 1, %s1326_s19   ;;  %s1256_s11 = scalar_lea.vmem %s1586_s24, 64 }
  0x2f   : > { %1112 = vmatpush3.bf16.msra.mxu0 %v1240_v7  ;;  %1133 = vmatprep.subr.bf16.mxu1 %v1352_v4  ;;  %p1257_p1 = scmp.ne.s32.totalorder %s1586_s24, %s1256_s11  ;;  %s1362_s13 = smov [#allocation2]  }
  0x30   : > { %1125 = vmatprep.subr.bf16.mxu0 %v1352_v4  ;;  %v523_v12 = vadd.s32 1, %v1077_v11  ;;  %v561_v43 = vshll.u32 %v521_v30, 8  ;;  %s1260_s17 = sshll.u32 %s1362_s13, 4  ;;  %s1261_s17 = int_to_ptr.vmem [resolvable:$false] %s1260_s17 }
  0x31   : > { %1122 = vmatmul.mubr.msk.bf16.vlgmr.msra.gmra.mrb[0].mxu1 %vm335_vm2, %v1472_v0  ;;  %p1258_p2 = pnand %p1257_p1, %p1442_p3  ;;  %s1262_s26 = scalar_lea.vmem %s1261_s17, 128 }
  0x32   : > { %1114 = vmatmul.mubr.msk.bf16.vlgmr.msra.gmra.mrb[0].mxu0 %vm335_vm2, %v1472_v0  ;;  %1135 = vmatprep.mubr.msk.bf16.mxu1 %vm1353_vm1, %v1352_v4  ;;  %vm524_vm3 = vcmp.gt.s32.totalorder %v523_v12, 0  ;;  %p1263_p5 = scmp.lt.s32.totalorder %s1586_s24, %s1261_s17  ;;  %p1264_p6 = scmp.lt.s32.totalorder %s1262_s26, %s1256_s11 }
  0x33   : > { %1129 = vmatprep.mubr.msk.bf16.mxu0 %vm1353_vm1, %v1352_v4  ;;  %v525_v13 = vsel %vm524_vm3, %v523_v12, 0  ;;  %p1259_p4 = pneg %p1258_p2 }
  0x34   : > { %v527_v14 = vand.u32 31, %v525_v13  ;;  %v526_v20 = vshrl.u32 %v525_v13, 5  ;;  %p1265_p7 = por %p1264_p6, %p1263_p5 }
  0x36   : > { %v528_v15 = vsub.s32 32, %v527_v14  ;;  %v539_v18 = vshll.u32 %v1354_v17, %v527_v14  ;;  %v530_v22 = vshll.u32 %v1355_v21, %v527_v14  ;;  %v533_v25 = vshll.u32 %v1356_v23, %v527_v14  ;;  %p1266_p8 = pnand %p1265_p7, %p1259_p4 }
  0x37   : > { %v536_v28 = vshll.u32 %v1357_v26, %v527_v14  ;;  %v542_v34 = vshll.u32 %v1358_v32, %v527_v14  ;;  %vm545_vm4 = vcmp.lt.s32.totalorder %v526_v20, 1  ;;  %vm547_vm5 = vcmp.lt.s32.totalorder %v526_v20, 3 }
  0x38   : > { %v531_v24 = vshrl.u32 %v1356_v23, %v528_v15  ;;  %v534_v27 = vshrl.u32 %v1357_v26, %v528_v15  ;;  %v537_v29 = vshrl.u32 %v1354_v17, %v528_v15  ;;  %v540_v33 = vshrl.u32 %v1358_v32, %v528_v15 }
  0x39   : > { %v543_v39 = vshrl.u32 %v1359_v38, %v528_v15  ;;  %vm546_vm6 = vcmp.lt.s32.totalorder %v526_v20, 2  ;;  %vm548_vm7 = vcmp.lt.s32.totalorder %v526_v20, 4  ;;  %v529_v44 = vshrl.u32 %v1355_v21, %v528_v15 }
  0x3a   : > { %v532_v31 = vor.u32 %v531_v24, %v530_v22  ;;  %v535_v35 = vor.u32 %v534_v27, %v533_v25  ;;  %v538_v36 = vor.u32 %v537_v29, %v536_v28  ;;  %v541_v37 = vor.u32 %v540_v33, %v539_v18 }
  0x3b   : > { %v544_v41 = vor.u32 %v543_v39, %v542_v34 }
  0x3c   : > { %v553_v40 = vsel %vm545_vm4, %v532_v31, %v535_v35  ;;  %v554_v42 = vsel %vm548_vm7, %v541_v37, 920167782  ;;  %v557_v46 = vsel %vm545_vm4, %v535_v35, %v538_v36  ;;  %v550_v47 = vsel %vm548_vm7, %v538_v36, 2102212464 }
  0x3d   : > { %v555_v45 = vsel %vm547_vm5, %v538_v36, %v554_v42  ;;  %v558_v49 = vsel %vm548_vm7, %v544_v41, 1326507024  ;;  %v549_v50 = vsel %vm545_vm4, %v529_v44, %v532_v31  ;;  %v551_v51 = vsel %vm547_vm5, %v535_v35, %v550_v47 }
  0x3e   : > { %v556_v48 = vsel %vm546_vm6, %v553_v40, %v555_v45  ;;  %v559_v52 = vsel %vm547_vm5, %v541_v37, %v558_v49  ;;  %v552_v53 = vsel %vm546_vm6, %v549_v50, %v551_v51 }
  0x3f   : > { %v560_v54 = vsel %vm546_vm6, %v557_v46, %v559_v52  ;;  %v1531_v55 = vmul.u32.u64.low %v561_v43, %v556_v48  ;;  %v1532_v56 = vmul.u32.u64.high %v561_v43, %v556_v48, %v1531_v55  ;;  %v568_v59 = vmul.u32 %v561_v43, %v552_v53 }
  0x40   : > { %v1534_v57 = vmul.u32.u64.low %v561_v43, %v560_v54  ;;  %v1535_v58 = vmul.u32.u64.high %v561_v43, %v560_v54, %v1534_v57  ;;  %vm724_vm6 = vcmask 64512  }
  0x41   : > { %v571_v60 = vadd.s32 1, %v1532_v56 }
  0x42   : > { %vm570_vm8 = vc.u32 %v1535_v58, %v1531_v55  ;;  %v569_v10 = vadd.s32 %v1531_v55, %v1535_v58 }
  0x43   : > { %v572_v61 = vsel %vm570_vm8, %v571_v60, %v1532_v56 }
  0x44   : > { %v573_v62 = vadd.s32 %v572_v61, %v568_v59 }
  0x46   : > { %v574_v63 = vadd.s32 536870912, %v573_v62 }
  0x48   : > { %v575_v1 = vshrl.u32 %v574_v63, 30 }
  0x4a   : > { %v576_v2 = vshll.u32 %v575_v1, 30  ;;  %v599_v25 = vsub.s32 4, %v575_v1 }
  0x4c   : > { %v577_v3 = vsub.s32 %v573_v62, %v576_v2  ;;  %v600_v28 = vsel %vm515_vm10, %v599_v25, %v575_v1 }
  0x4d   : > { %v602_v29 = vsel %vm514_vm11, 0, %v600_v28 }
  0x4e   : > { %v579_v5 = vsub.s32 0, %v577_v3  ;;  %v606_v30 = vand.u32 3, %v602_v29  ;;  %v709_v50 = vadd.s32 3, %v602_v29 }
  0x50   : > { %v1078_v6 = vmin.u32 %v579_v5, %v577_v3  ;;  %vm611_vm12 = vcmp.eq.s32.totalorder %v606_v30, 2  ;;  %vm608_vm13 = vcmp.eq.s32.totalorder %v606_v30, 0  ;;  %vm607_vm14 = vcmp.lt.s32.totalorder %v606_v30, 2  ;;  %v1242_v5 = vld [vmem:[%s1482_s20 + $0x28] sm:$0xff]  }
  0x51   : > { %v710_v51 = vand.u32 3, %v709_v50 }
  0x52   : > { %v581_v7 = vclz %v1078_v6 }
  0x53   : > { %vm712_vm3 = vcmp.eq.s32.totalorder %v710_v51, 0  ;;  %vm715_vm4 = vcmp.eq.s32.totalorder %v710_v51, 2  ;;  %vm711_vm5 = vcmp.lt.s32.totalorder %v710_v51, 2  ;;  %v914_v51 = vld [vmem:[%s1489_s15] sm:$0xf] }
  0x54   : > { %v1079_v9 = vadd.s32 4294967294, %v581_v7 }
  0x56   : > { %vm1080_vm9 = vcmp.lt.s32.totalorder %v1079_v9, 0 }
  0x57   : > { %v584_v11 = vsel %vm1080_vm9, 0, %v1079_v9 }
  0x58   : > { %v585_v12 = vsub.s32 32, %v584_v11  ;;  %v586_v13 = vshll.u32 %v577_v3, %v584_v11  ;;  %v589_v14 = vsub.s32 4294967266, %v584_v11  ;;  %v1241_v3 = vld [vmem:[%s1482_s20 + $0x20] sm:$0xff]   ;;  %s1090_s20 = sshll.u32 %s1338_s22, 6  ;;  %s921_s22 = scalar_lea.sflag [#allocation3], %s1661_s10 }
  0x59   : > { %1126 = vmatpush3.bf16.msra.mxu0 %v1241_v3  ;;  %s1584_s9 = scalar_lea.hbm %s1645_s5, %s1090_s20 }
  0x5a   : > { %v587_v15 = vshrl.u32 %v569_v10, %v585_v12  ;;  %v590_v17 = vadd.s32 127, %v589_v14  ;;  %1127 = vmatprep.subr.bf16.mxu0 %v1352_v4 }
  0x5c   : > { %v588_v18 = vor.u32 %v587_v15, %v586_v13  ;;  %v591_v19 = vshll.u32 %v590_v17, 23 }
  0x5d   : > { %1128 = vmatpush3.bf16.msra.mxu0 %v1242_v5 }
  0x5e   : > { %v592_v20 = vor.u32 4788187, %v591_v19  ;;  %v595_v21 = vcvt.s32.f32 %v588_v18  ;;  %1139 = vmatprep.subr.bf16.mxu0 %v1352_v4 }
  0x60   : > { %v593_v22 = vand.u32 2147483647, %v592_v20  ;;  %1130 = vmatmul.mubr.msk.bf16.vlgmr.msra.gmra.mrb[4].mxu0 %vm335_vm2, %v1472_v0  ;;  %vm816_vm2 = vcmask 1043456  }
  0x61   : > { %1141 = vmatprep.mubr.msk.bf16.mxu0 %vm1353_vm1, %v1352_v4 }
  0x62   : > { %v596_v23 = vmul.f32 %v595_v21, %v593_v22 }
  0x64   : > { %v597_v24 = vxor.u32 2147483648, %v596_v23 }
  0x66   : > { %v598_v26 = vsel %vm515_vm10, %v597_v24, %v596_v23 }
  0x67   : > { %v601_v27 = vsel %vm514_vm11, %v1519_v8, %v598_v26 }
  0x68   : > { %1244 = vcosq.f32 %v601_v27 }
  0x69   : > { %1246 = vsinq.f32 %v601_v27 }
  0x72   : > { %v1245_v31 = vpop.eup %1244 }
  0x73   : > { %v1247_v32 = vpop.eup %1246  ;;  %v612_v33 = vxor.u32 2147483648, %v1245_v31 }
  0x74   : > { %v609_v34 = vxor.u32 2147483648, %v1247_v32 }
  0x75   : > { %v613_v16 = vsel %vm611_vm12, %v612_v33, %v1247_v32  ;;  %v717_v53 = vsel %vm715_vm4, %v612_v33, %v1247_v32 }
  0x76   : > { %v610_v35 = vsel %vm608_vm13, %v1245_v31, %v609_v34  ;;  %v714_v52 = vsel %vm712_vm3, %v1245_v31, %v609_v34 }
  0x77   : > { %v614_v36 = vsel %vm607_vm14, %v610_v35, %v613_v16  ;;  %v718_v54 = vsel %vm711_vm5, %v714_v52, %v717_v53  ;;  %v915_v52 = vunpack.c.l.bf16 %v914_v51 }
  0x78   : > { %v615_v37 = vsel %vm605_vm15, nan, %v614_v36  ;;  %v719_v55 = vsel %vm605_vm15, nan, %v718_v54 }
  0x79   : > { %721 = vrot.lane.b32.xlu1 %v615_v37, %s1360_s21  ;;  %v726_v9 = vsub.f32 0.0, %v719_v55 }
  0x7d   : > { %728 = vrot.lane.b32.xlu1 %v719_v55, %s1360_s21 }
  0xeb   : > { %v722_v6 = vpop.permute.xlu1 %721 }
  0xec   : > { %v725_v10 = vsel %vm724_vm6, %v615_v37, %v722_v6 }
  0xef   : > { %v729_v7 = vpop.permute.xlu1 %728 }
  0xf0   : > { %v731_v13 = vsel %vm724_vm6, %v726_v9, %v729_v7 }
 0x104   : > { %v430_v38 = vpop.f32.mrb[0].mxu1 }
 0x105   : > { %v373_v39 = vpop.f32.mrb[0].mxu0  ;;  %v1123_v40 = vpop.f32.mrb[1].mxu1  ;;  %v504_v41 = vmul.f32 %v430_v38, %v430_v38 }
 0x106   : > { %v493_v42 = vmul.f32 %v373_v39, %v373_v39  ;;  %v1115_v43 = vpop.f32.mrb[1].mxu0  ;;  %v433_v44 = vpop.f32.mrb[2].mxu1 }
 0x107   : > { %v376_v45 = vpop.f32.mrb[2].mxu0  ;;  %v1124_v46 = vpop.f32.mrb[3].mxu1  ;;  %v505_v47 = vsel %vm494_vm0, %v504_v41, 0.0 }
 0x108   : > { %506 = vadd.xlane.f32.xlu0 %v505_v47  ;;  %v1116_v48 = vpop.f32.mrb[3].mxu0  ;;  %v495_v49 = vsel %vm494_vm0, %v493_v42, 0.0  ;;  %v1243_v42 = vld [vmem:[%s1487_s14] sm:$0xff]  }
 0x10c   : > { %496 = vadd.xlane.f32.xlu0 %v495_v49 }
 0x133   : > { %v487_v32 = vpop.f32.mrb[4].mxu0 }
 0x134   : > { %v812_v33 = vpack.c.bf16 %v487_v32, %v487_v32  ;;  %v1131_v34 = vpop.f32.mrb[5].mxu0 }
 0x135   : > { %v490_v16 = vpop.f32.mrb[6].mxu0 }
 0x136   : > { %v818_v35 = vsel %vm816_vm2, %v812_v33, 0  ;;  %v1132_v36 = vpop.f32.mrb[7].mxu0 }
 0x137   : > { %1140 = vmatpush3.bf16.msra.mxu0 %v818_v35 }
 0x195   : > { %v507_v56 = vpop.xlane.xlu0 %506 }
 0x196   : > { %v508_v57 = vmul.f32 0.0625, %v507_v56 }
 0x198   : > { %v509_v58 = vadd.f32 1e-05, %v508_v57 }
 0x199   : > { %v497_v59 = vpop.xlane.xlu0 %496 }
 0x19a   : > { %1248 = vrsqrt.f32 %v509_v58  ;;  %v499_v60 = vmul.f32 0.0625, %v497_v59 }
 0x19c   : > { %v500_v61 = vadd.f32 1e-05, %v499_v60 }
 0x19e   : > { %1250 = vrsqrt.f32 %v500_v61 }
 0x1a4   : > { %v1249_v62 = vpop.eup %1248 }
 0x1a5   : > { %v511_v63 = vmul.f32 %v1249_v62, %v430_v38 }
 0x1a7   : > { %748 = vrot.lane.b32.xlu1 %v511_v63, %s1360_s21  ;;  %745 = vrot.lane.b32.xlu0 %v511_v63, %s1361_s23  ;;  %v743_v15 = vmul.f32 %v725_v10, %v511_v63 }
 0x1a8   : > { %v1251_v8 = vpop.eup %1250 }
 0x1a9   : > { %v502_v1 = vmul.f32 0.25, %v1251_v8 }
 0x1ab   : > { %v503_v2 = vmul.f32 %v502_v1, %v373_v39 }
 0x1ad   : > { %734 = vrot.lane.b32.xlu1 %v503_v2, %s1361_s23  ;;  %v732_v23 = vmul.f32 %v725_v10, %v503_v2 }
 0x1b1   : > { %737 = vrot.lane.b32.xlu1 %v503_v2, %s1360_s21 }
 0x219   : > { %v749_v11 = vpop.permute.xlu1 %748  ;;  %v746_v12 = vpop.permute.xlu0 %745 }
 0x21a   : > { %v751_v14 = vsel %vm724_vm6, %v746_v12, %v749_v11 }
 0x21b   : > { %v752_v17 = vmul.f32 %v751_v14, %v731_v13 }
 0x21d   : > { %v753_v18 = vadd.f32 %v752_v17, %v743_v15 }
 0x21f   : > { %v755_v19 = vpack.c.bf16 %v753_v18, %v753_v18  ;;  %v735_v0 = vpop.permute.xlu1 %734 }
 0x221   : > { %v760_v20 = vsel %vm494_vm0, %v755_v19, 0 }
 0x222   : > { %1134 = vmatpush3.bf16.xpose.msra.mxu1 %v760_v20 }
 0x223   : > { %v738_v21 = vpop.permute.xlu1 %737  ;;  %1145 = vmatprep.subr.bf16.mxu1 %v1352_v4 }
 0x224   : > { %v740_v22 = vsel %vm724_vm6, %v735_v0, %v738_v21 }
 0x225   : > { %v741_v24 = vmul.f32 %v740_v22, %v731_v13 }
 0x227   : > { %v742_v25 = vadd.f32 %v741_v24, %v732_v23 }
 0x229   : > { %v754_v26 = vpack.c.bf16 %v742_v25, %v742_v25 }
 0x22b   : > { %1136 = vmatmul.mubr.msk.bf16.vlgmr.msra.gmra.mrb[4].mxu1 %vm494_vm0, %v754_v26 }
 0x22c   : > { %1147 = vmatprep.mubr.msk.bf16.mxu1 %vm1353_vm1, %v1352_v4  ;;  %1146 = vmatpush3.bf16.msra.mxu1 %v1243_v42  ;;  %vm918_vm1 = vcmask 257024  }
 0x2fe   : > { %v796_v27 = vpop.f32.mrb[4].mxu1 }
 0x2ff   : > { %v1137_v28 = vpop.f32.mrb[5].mxu1  ;;  %v802_v29 = vsel %vm724_vm6, %v796_v27, -inf }
 0x300   : > { %803 = vmax.xlane.f32.xlu1 %v802_v29  ;;  %v799_v30 = vpop.f32.mrb[6].mxu1 }
 0x301   : > { %v1138_v31 = vpop.f32.mrb[7].mxu1 }
 0x38d   : > { %v804_v37 = vpop.xlane.xlu1 %803 }
 0x38e   : > { %v805_v38 = vsub.f32 %v796_v27, %v804_v37 }
 0x390   : > { %v806_v39 = vmul.f32 1.442695, %v805_v38 }
 0x392   : > { %1252 = vpow2.f32 %v806_v39 }
 0x39c   : > { %v1253_v4 = vpop.eup %1252 }
 0x39d   : > { %v808_v40 = vsel %vm724_vm6, %v1253_v4, 0.0  ;;  %v811_v41 = vpack.c.bf16 %v1253_v4, %v1253_v4 }
 0x39e   : > { %809 = vadd.xlane.f32.xlu0 %v808_v40 }
 0x39f   : > { %1142 = vmatmul.mubr.msk.bf16.vlgmr.msra.gmra.mrb[8].mxu0 %vm724_vm6, %v811_v41 }
 0x42b   : > { %v810_v43 = vpop.xlane.xlu0 %809 }
 0x42c   : > { %1254 = vrcp.f32 %v810_v43 }
 0x436   : > { %v1255_v44 = vpop.eup %1254 }
 0x472   : > { %v854_v45 = vpop.f32.mrb[8].mxu0 }
 0x473   : > { %v861_v46 = vmul.f32 %v1255_v44, %v854_v45  ;;  %v1143_v47 = vpop.f32.mrb[9].mxu0 }
 0x474   : > { %v857_v48 = vpop.f32.mrb[10].mxu0 }
 0x475   : > { %v862_v49 = vpack.c.bf16 %v861_v46, %v861_v46  ;;  %v1144_v50 = vpop.f32.mrb[11].mxu0 }
 0x477   : > { %1148 = vmatmul.mubr.msk.bf16.vlgmr.msra.gmra.mrb[8].mxu1 %vm494_vm0, %v862_v49 }
 0x54a   : > { %v908_v53 = vpop.f32.mrb[8].mxu1 }
 0x54b   : > { %v916_v54 = vadd.f32 %v915_v52, %v908_v53  ;;  %v1149_v55 = vpop.f32.mrb[9].mxu1 }
 0x54c   : > { %v911_v56 = vpop.f32.mrb[10].mxu1 }
 0x54d   : > { %v917_v57 = vpack.c.bf16 %v916_v54, %v916_v54  ;;  %v1150_v58 = vpop.f32.mrb[11].mxu1 }
 0x54f   : > { %919 = vst.msk [vmem:[%s1489_s15] sm:$0xf] %vm918_vm1, %v917_v57 }
 0x550   : > { %1269 = shalt.err (!%p1266_p8)
}
 0x551   : > { %s1270_s27 = scalar_lea.hbm %s1584_s9, 64  ;;  %s1274_s12 = scalar_lea.hbm %s1645_s5, 128 }
 0x552   : > { %p1271_p10 = scmp.ne.s32.totalorder %s1584_s9, %s1270_s27  ;;  %p1275_p13 = scmp.lt.u32.totalorder %s1584_s9, %s1645_s5 }
 0x553   : > { %p1276_p0 = scmp.lt.u32.totalorder %s1274_s12, %s1270_s27  ;;  %p1278_p2 = scmp.lt.u32.totalorder %s1270_s27, %s1584_s9 }
 0x554   : > { %p1272_p11 = pnand %p1271_p10, %p1442_p3 }
 0x555   : > { %p1277_p1 = por %p1276_p0, %p1275_p13 }
 0x556   : > { %p1273_p12 = pneg %p1272_p11 }
 0x557   : > { %p1279_p4 = por %p1278_p2, %p1277_p1 }
 0x559   : > { %p1280_p5 = pnand %p1279_p4, %p1273_p12 }
 0x55b   : > { %1283 = shalt.err (!%p1280_p5)
}
 0x55c   : > { %1156 = dma.vmem_to_hbm [thread:$0]  (%p1442_p3), %s1586_s24, 64, %s1584_s9, %s921_s22  }
 0x55d PF: > { %p1162_p6 = scmp.ge.s32.totalorder %s1350_s25, 2  ;;  %s946_s28 = sand.u32 1, %s1322_s18  }
 0x55e   : > { %s947_s21 = scalar_lea.sflag [#allocation3], %s946_s28 }
 0x55f   : > { %p1159_p7 = pnand %p1162_p6, %p1452_p9 }
 0x561   : > { %1317 = dma.done.wait (!%p1159_p7), %s947_s21, 64  }
 0x562   : > { %1319 = vsyncadd (!%p1159_p7), %s947_s21, 4294967232  ;;  %s18_s25 = sadd.s32 1, %s1350_s25   ;;  %s1663_s23 = sld [smem:[#allocation5_spill]] }
 0x563   : > { %p15_p8 = scmp.ge.s32.totalorder %s18_s25, 6   ;;  %s1664_s20 = sld [smem:[#allocation11_spill]] }
 0x564   : > { %s1665_s21 = sld [smem:[#allocation6_spill]]  ;;  %s1666_s22 = sld [smem:[#allocation7_spill]] }
 0x565   : > { %s1667_s30 = sld [smem:[#allocation8_spill]]  ;;  %s1668_s24 = sld [smem:[#allocation9_spill]] }
 0x566   : > { %s1669_s18 = smov %s1326_s19  ;;  %17 = sbr.rel (!%p15_p8) target bundleno = 5 (0x5), region = 90 }
 0x568   : > { %s1670_s19 = smov %s1663_s23 }
 0x56b   : > { %s1671_s23 = smov %s1667_s30 }
 0x56d   :  { %952 = vsyncpa [#allocation3], 1 }
 0x56e   :  { %954 = vsyncpa [#allocation3 + $0x1], 1 }

</bundles_post_ra>
